<compile_context>
chip_gen: v7x
topology: tpu7x:2x2x1
jax: 0.10.0
libtpu: 0.0.40
codegen_flags: <defaults>
</compile_context>

<pallas_src>
import functools

import jax
import jax.numpy as jnp
import numpy as np
from jax.experimental import pallas as pl
from jax.experimental.pallas import tpu as pltpu

LANES = 128         # points per vreg row
TR_GRANULE = 128    # tile-height granularity (rows)
MAX_TR = 2048       # max tile height: ~5 MiB double-buffered VMEM (see header)


# ---------------------------------------------------------------------------
# pose utilities (tiny 4x4 math, plain JAX)
# ---------------------------------------------------------------------------
def euler2mat(angle):
    """angle: [B, 3] (rx, ry, rz) -> [B, 3, 3]"""
    x, y, z = angle[:, 0], angle[:, 1], angle[:, 2]
    cosz, sinz = jnp.cos(z), jnp.sin(z)
    zeros = jnp.zeros_like(z)
    ones = jnp.ones_like(z)
    zmat = jnp.stack([cosz, -sinz, zeros,
                      sinz, cosz, zeros,
                      zeros, zeros, ones], axis=1).reshape(-1, 3, 3)
    cosy, siny = jnp.cos(y), jnp.sin(y)
    ymat = jnp.stack([cosy, zeros, siny,
                      zeros, ones, zeros,
                      -siny, zeros, cosy], axis=1).reshape(-1, 3, 3)
    cosx, sinx = jnp.cos(x), jnp.sin(x)
    xmat = jnp.stack([ones, zeros, zeros,
                      zeros, cosx, -sinx,
                      zeros, sinx, cosx], axis=1).reshape(-1, 3, 3)
    return xmat @ ymat @ zmat


def pose_vec2mat(vec):
    """vec: [B, 6] (tx,ty,tz,rx,ry,rz) -> [B, 4, 4]"""
    translation = vec[:, :3][..., None]
    rot_mat = euler2mat(vec[:, 3:])
    transform = jnp.concatenate([rot_mat, translation], axis=2)          # [B,3,4]
    bottom = jnp.tile(jnp.array([[[0., 0., 0., 1.]]], dtype=vec.dtype),
                      (vec.shape[0], 1, 1))
    return jnp.concatenate([transform, bottom], axis=1)                  # [B,4,4]


# ---------------------------------------------------------------------------
# Pallas kernel: folded point-to-line distance + per-tile partial sums
# ---------------------------------------------------------------------------
def _loss_kernel(pz_ref, q_ref, coords_ref, out_ref):
    # pz_ref    : SMEM (4,)          ProjM row 2 (depth row)
    # q_ref     : VMEM (TR, 4)       per-row folded coeffs q0..q3 (0 on pad rows)
    # coords_ref: VMEM (3, TR, 128)  bf16 X, Y, Z planes (w == 1 folded into q/pz)
    # out_ref   : VMEM (1, 8, 128)   per-tile lane-dense partial sums
    X = coords_ref[0].astype(jnp.float32)
    Y = coords_ref[1].astype(jnp.float32)
    Z = coords_ref[2].astype(jnp.float32)

    q = q_ref[...]                         # (TR, 4)
    q0 = q[:, 0:1]                         # (TR, 1) -> lane-broadcast
    q1 = q[:, 1:2]
    q2 = q[:, 2:3]
    q3 = q[:, 3:4]

    # signed numerator (inv_d already folded):  s = inv_d*(a*px + b*py + c*pz)
    s = q0 * X + q1 * Y + q2 * Z + q3
    # depth:  pz = ProjM[2] . [X, Y, Z, 1]   (4 SMEM scalars)
    pz = pz_ref[0] * X + pz_ref[1] * Y + pz_ref[2] * Z + pz_ref[3]

    # dist = |s| / |pz| = |s * (1/pz)| ; approx reciprocal runs on the idle EUP
    dist = jnp.abs(s * pl.reciprocal(pz, approx=True))        # (TR, 128)

    tr = dist.shape[0]
    out_ref[0] = jnp.sum(dist.reshape(tr // 8, 8, LANES), axis=0)


def _choose_tiling(r_raw, max_tr=MAX_TR, gran=TR_GRANULE):
    """Tile height (rows, multiple of `gran`) and padded row count.

    Aims for >= 2 tiles whenever r_raw allows so the 'parallel' grid axis can
    use both v7x TensorCores; never falls back to tiny tiles (rows are padded
    instead of searching for divisors).
    """
    half = -(-r_raw // 2)                      # ceil(r_raw / 2)
    tr = -(-half // gran) * gran               # round up to granularity
    tr = max(gran, min(max_tr, tr))
    r_pad = -(-r_raw // tr) * tr
    return tr, r_pad


def _loss_sum_pallas(pz_row, q_rows, coords, tr):
    # pz_row: [4]; q_rows: [R_pad, 4] f32; coords: [3, R_pad, 128] bf16
    r_pad = coords.shape[1]
    assert r_pad % tr == 0 and tr % 8 == 0
    ntiles = r_pad // tr
    n_elems = r_pad * LANES

    cost = pl.CostEstimate(
        flops=16 * n_elems,
        transcendentals=n_elems,
        bytes_accessed=int(coords.size) * coords.dtype.itemsize
        + int(q_rows.size) * 4
        + ntiles * 8 * LANES * 4
        + 16,
    )

    partials = pl.pallas_call(
        _loss_kernel,
        out_shape=jax.ShapeDtypeStruct((ntiles, 8, LANES), jnp.float32),
        grid_spec=pltpu.PrefetchScalarGridSpec(
            num_scalar_prefetch=0,
            grid=(ntiles,),
            in_specs=[
                pl.BlockSpec(memory_space=pltpu.MemorySpace.SMEM),      # pz row
                pl.BlockSpec((tr, 4), lambda i: (i, 0)),                # q table
                pl.BlockSpec((3, tr, LANES), lambda i: (0, i, 0)),      # coords
            ],
            out_specs=pl.BlockSpec((1, 8, LANES), lambda i: (i, 0, 0)),
        ),
        compiler_params=pltpu.CompilerParams(
            dimension_semantics=("parallel",),
            vmem_limit_bytes=32 * 1024 * 1024),
        cost_estimate=cost,
    )(pz_row, q_rows, coords)
    return jnp.sum(partials)


# ---------------------------------------------------------------------------
# data packing (hoisted: run once per dataset, not per optimizer step)
# ---------------------------------------------------------------------------
def pack_inputs(lidar_lines, board_lines, max_tr=MAX_TR):
    """
    lidar_lines : [D, L, Npts, 4] homogeneous lidar points (w must be 1)
    board_lines : [D, L, 2, 2]    2D endpoints of each board line
    returns (coords [3, R_pad, 128] bf16,
             abc_rows [R_pad, 3] f32  (inv_d folded, 0 on pad rows),
             n_points (real point count), tr (tile height in rows))
    """
    D, L, Npts, C = lidar_lines.shape
    assert C == 4
    assert Npts % LANES == 0, "each 128-lane row must map to a single board line"
    w = np.asarray(lidar_lines[..., 3])
    assert np.allclose(w, 1.0), "homogeneous w must be 1 (folded into q / pz)"

    M = D * L * Npts
    r_raw = M // LANES
    rows_per_line = Npts // LANES
    tr, r_pad = _choose_tiling(r_raw, max_tr)

    # coordinate planes, lane-major point packing; W plane dropped (w == 1)
    coords = (lidar_lines[..., :3].reshape(M, 3).T
              .reshape(3, r_raw, LANES).astype(jnp.float32))
    if r_pad > r_raw:
        # pad rows duplicate the last real point (pz stays nonzero); their
        # folded coefficients are 0, so they contribute exactly 0 to the loss.
        pad = jnp.broadcast_to(coords[:, r_raw - 1:r_raw, :],
                               (3, r_pad - r_raw, LANES))
        coords = jnp.concatenate([coords, pad], axis=1)
    coords = coords.astype(jnp.bfloat16)        # halve the dominant HBM stream

    # per-line coefficients of |a*U + b*V + c| / sqrt(a^2 + b^2), inv_d folded
    x1 = board_lines[:, :, 0, 0]
    y1 = board_lines[:, :, 0, 1]
    x2 = board_lines[:, :, 1, 0]
    y2 = board_lines[:, :, 1, 1]
    a = y2 - y1
    b = -(x2 - x1)
    c = x2 * y1 - y2 * x1
    inv_d = 1.0 / jnp.sqrt(a * a + b * b)
    abc = jnp.stack([a * inv_d, b * inv_d, c * inv_d], axis=-1).reshape(D * L, 3)
    abc_rows = jnp.repeat(abc, rows_per_line, axis=0)           # [r_raw, 3]
    if r_pad > r_raw:
        abc_rows = jnp.concatenate(
            [abc_rows, jnp.zeros((r_pad - r_raw, 3), abc_rows.dtype)], axis=0)
    return coords, abc_rows.astype(jnp.float32), int(M), int(tr)


# ---------------------------------------------------------------------------
# forward(): DefaultModel.forward equivalent (loss only)
# ---------------------------------------------------------------------------
@functools.partial(jax.jit, static_argnums=(5, 6))
def forward_packed(T_vec, K, add_t, coords, abc_rows, n_points, tr):
    Mat = add_t @ pose_vec2mat(T_vec)[0]                        # [4,4]
    ProjM = (K @ Mat).astype(jnp.float32)                       # [3,4]
    # fold per-row line coefficients through ProjM: q = [a,b,c] @ ProjM
    q_rows = jnp.dot(abc_rows, ProjM,
                     precision=jax.lax.Precision.HIGHEST)       # [R_pad, 4]
    pz_row = ProjM[2]                                           # [4]
    total = _loss_sum_pallas(pz_row, q_rows, coords, tr)
    return total / jnp.float32(n_points)


def forward(T_vec, K, add_t, lidar_lines, board_lines):
    coords, abc_rows, n_points, tr = pack_inputs(lidar_lines, board_lines)
    return forward_packed(T_vec, K, add_t, coords, abc_rows, n_points, tr)


# ---------------------------------------------------------------------------
# pure-JAX reference (mirrors the PyTorch forward math)
# ---------------------------------------------------------------------------
def reference_loss(T_vec, K, add_t, lidar_lines, board_lines):
    Mat = add_t @ pose_vec2mat(T_vec)[0]
    ProjM = K @ Mat
    D, L, Npts, _ = lidar_lines.shape
    loss = jnp.float32(0.0)
    N = 0.0
    for d in range(D):
        for l in range(L):
            Pts = lidar_lines[d, l]                                    # [Npts,4]
            proj = jnp.einsum('ij,nj->ni', ProjM, Pts,
                              precision=jax.lax.Precision.HIGHEST)     # [Npts,3]
            U = proj[:, 0] / proj[:, 2]
            V = proj[:, 1] / proj[:, 2]
            x1, y1 = board_lines[d, l, 0, 0], board_lines[d, l, 0, 1]
            x2, y2 = board_lines[d, l, 1, 0], board_lines[d, l, 1, 1]
            dist = jnp.abs((y2 - y1) * U - (x2 - x1) * V + x2 * y1 - y2 * x1) \
                   / jnp.sqrt((y2 - y1) ** 2 + (x2 - x1) ** 2)
            loss = loss + jnp.sum(dist)
            N += Npts
    return loss / N


if __name__ == "__main__":
    key = jax.random.PRNGKey(0)
    D, L, Npts = 2, 4, 256                     # 2 datapoints, 4 board lines each
    k1, k2, k3 = jax.random.split(key, 3)

    # lidar points: x in [2,10] keeps projected depth away from zero for the
    # given rotation guess; w = 1 (homogeneous)
    x_coord = jax.random.uniform(k1, (D, L, Npts, 1), minval=2.0, maxval=10.0)
    yz_coord = jax.random.uniform(k2, (D, L, Npts, 2), minval=-2.0, maxval=2.0)
    lidar_lines = jnp.concatenate(
        [x_coord, yz_coord, jnp.ones((D, L, Npts, 1))], axis=-1).astype(jnp.float32)

    board_lines = jax.random.uniform(
        k3, (D, L, 2, 2), minval=0.0, maxval=640.0).astype(jnp.float32)

    # deterministic "parameters" of the module
    guess = jnp.array([[0.0, 0.0, 0.0, 1.569, 0.0, 1.5949]], dtype=jnp.float32)  # self.T
    K = jnp.array([[500.0, 0.0, 320.0, 0.0],
                   [0.0, 500.0, 240.0, 0.0],
                   [0.0, 0.0, 1.0, 0.0]], dtype=jnp.float32)
    add_t = jnp.eye(4, dtype=jnp.float32)

    # pack once (amortized in an optimizer loop), run kernel
    coords, abc_rows, n_points, tr = pack_inputs(lidar_lines, board_lines)
    out = forward_packed(guess, K, add_t, coords, abc_rows, n_points, tr)
    out = jax.block_until_ready(out)

    # Tight check: reference on the same bf16-rounded coordinates (isolates the
    # kernel math; slack covers the approx-EUP reciprocal + summation order).
    r_raw = n_points // LANES
    pts_rounded = (coords.astype(jnp.float32)[:, :r_raw, :]
                   .reshape(3, n_points).T.reshape(D, L, Npts, 3))
    lidar_rounded = jnp.concatenate(
        [pts_rounded, jnp.ones((D, L, Npts, 1), jnp.float32)], axis=-1)
    ref_rounded = reference_loss(guess, K, add_t, lidar_rounded, board_lines)

    # Loose check vs full-precision inputs: bounds the deliberate bf16-storage
    # error of the coordinate stream (well under 1% for this data).
    ref_full = reference_loss(guess, K, add_t, lidar_lines, board_lines)

    out_np = np.asarray(out)
    ref_r = np.asarray(ref_rounded)
    ref_f = np.asarray(ref_full)
    assert np.allclose(out_np, ref_r, rtol=1e-2, atol=1e-2), (out_np, ref_r)
    assert np.allclose(out_np, ref_f, rtol=5e-2, atol=1e-1), (out_np, ref_f)
    print("KERNEL_OK")
</pallas_src>

<mosaic_0001>
module attributes {stable_mosaic.version = 11 : i64} {
  func.func @_loss_kernel(%arg0: i32, %arg1: memref<4xf32, #tpu.memory_space<smem>>, %arg2: memref<128x4xf32, #tpu.memory_space<vmem>>, %arg3: memref<3x128x128xbf16, #tpu.memory_space<vmem>>, %arg4: memref<1x8x128xf32, #tpu.memory_space<vmem>>) attributes {dimension_semantics = [#tpu.dimension_semantics<parallel>], iteration_bounds = array<i64: 1>, scalar_prefetch = 0 : i64, scratch_operands = 0 : i64, tpu.core_type = #tpu.core_type<tc>, window_params = [{transform_indices = @transform_0, window_bounds = array<i64: 4>}, {transform_indices = @transform_1, window_bounds = array<i64: 128, 4>}, {transform_indices = @transform_2, window_bounds = array<i64: 3, 128, 128>}, {transform_indices = @transform_3, window_bounds = array<i64: 1, 8, 128>}]} {
    %c0 = arith.constant 0 : index
    %c0_0 = arith.constant 0 : index
    %c0_1 = arith.constant 0 : index
    %0 = vector.load %arg3[%c0, %c0_0, %c0_1] : memref<3x128x128xbf16, #tpu.memory_space<vmem>>, vector<1x128x128xbf16>
    %1 = vector.shape_cast %0 : vector<1x128x128xbf16> to vector<128x128xbf16>
    %2 = arith.extf %1 : vector<128x128xbf16> to vector<128x128xf32>
    %c1 = arith.constant 1 : index
    %c0_2 = arith.constant 0 : index
    %c0_3 = arith.constant 0 : index
    %3 = vector.load %arg3[%c1, %c0_2, %c0_3] : memref<3x128x128xbf16, #tpu.memory_space<vmem>>, vector<1x128x128xbf16>
    %4 = vector.shape_cast %3 : vector<1x128x128xbf16> to vector<128x128xbf16>
    %5 = arith.extf %4 : vector<128x128xbf16> to vector<128x128xf32>
    %c2 = arith.constant 2 : index
    %c0_4 = arith.constant 0 : index
    %c0_5 = arith.constant 0 : index
    %6 = vector.load %arg3[%c2, %c0_4, %c0_5] : memref<3x128x128xbf16, #tpu.memory_space<vmem>>, vector<1x128x128xbf16>
    %7 = vector.shape_cast %6 : vector<1x128x128xbf16> to vector<128x128xbf16>
    %8 = arith.extf %7 : vector<128x128xbf16> to vector<128x128xf32>
    %c0_6 = arith.constant 0 : index
    %c0_7 = arith.constant 0 : index
    %9 = vector.load %arg2[%c0_6, %c0_7] : memref<128x4xf32, #tpu.memory_space<vmem>>, vector<128x4xf32>
    %10 = vector.extract_strided_slice %9 {offsets = [0, 0], sizes = [128, 1], strides = [1, 1]} : vector<128x4xf32> to vector<128x1xf32>
    %11 = vector.extract_strided_slice %9 {offsets = [0, 1], sizes = [128, 1], strides = [1, 1]} : vector<128x4xf32> to vector<128x1xf32>
    %12 = vector.extract_strided_slice %9 {offsets = [0, 2], sizes = [128, 1], strides = [1, 1]} : vector<128x4xf32> to vector<128x1xf32>
    %13 = vector.extract_strided_slice %9 {offsets = [0, 3], sizes = [128, 1], strides = [1, 1]} : vector<128x4xf32> to vector<128x1xf32>
    %14 = vector.broadcast %10 : vector<128x1xf32> to vector<128x128xf32>
    %15 = arith.mulf %14, %2 : vector<128x128xf32>
    %16 = vector.broadcast %11 : vector<128x1xf32> to vector<128x128xf32>
    %17 = arith.mulf %16, %5 : vector<128x128xf32>
    %18 = arith.addf %15, %17 : vector<128x128xf32>
    %19 = vector.broadcast %12 : vector<128x1xf32> to vector<128x128xf32>
    %20 = arith.mulf %19, %8 : vector<128x128xf32>
    %21 = arith.addf %18, %20 : vector<128x128xf32>
    %22 = vector.broadcast %13 : vector<128x1xf32> to vector<128x128xf32>
    %23 = arith.addf %21, %22 : vector<128x128xf32>
    %c0_8 = arith.constant 0 : index
    %24 = memref.load %arg1[%c0_8] : memref<4xf32, #tpu.memory_space<smem>>
    %25 = vector.broadcast %24 : f32 to vector<128x128xf32>
    %26 = arith.mulf %25, %2 : vector<128x128xf32>
    %c1_9 = arith.constant 1 : index
    %27 = memref.load %arg1[%c1_9] : memref<4xf32, #tpu.memory_space<smem>>
    %28 = vector.broadcast %27 : f32 to vector<128x128xf32>
    %29 = arith.mulf %28, %5 : vector<128x128xf32>
    %30 = arith.addf %26, %29 : vector<128x128xf32>
    %c2_10 = arith.constant 2 : index
    %31 = memref.load %arg1[%c2_10] : memref<4xf32, #tpu.memory_space<smem>>
    %32 = vector.broadcast %31 : f32 to vector<128x128xf32>
    %33 = arith.mulf %32, %8 : vector<128x128xf32>
    %34 = arith.addf %30, %33 : vector<128x128xf32>
    %c3 = arith.constant 3 : index
    %35 = memref.load %arg1[%c3] : memref<4xf32, #tpu.memory_space<smem>>
    %36 = vector.broadcast %35 : f32 to vector<128x128xf32>
    %37 = arith.addf %34, %36 : vector<128x128xf32>
    %38 = tpu.reciprocal %37 {approx = true} : vector<128x128xf32> -> vector<128x128xf32>
    %39 = arith.mulf %23, %38 : vector<128x128xf32>
    %40 = math.absf %39 : vector<128x128xf32>
    %41 = vector.shape_cast %40 : vector<128x128xf32> to vector<16x8x128xf32>
    %cst = arith.constant dense<0.000000e+00> : vector<8x128xf32>
    %42 = vector.multi_reduction <add>, %41, %cst [0] : vector<16x8x128xf32> to vector<8x128xf32>
    %c0_11 = arith.constant 0 : index
    %c0_12 = arith.constant 0 : index
    %c0_13 = arith.constant 0 : index
    %43 = vector.load %arg4[%c0_11, %c0_12, %c0_13] : memref<1x8x128xf32, #tpu.memory_space<vmem>>, vector<1x8x128xf32>
    %44 = vector.shape_cast %43 : vector<1x8x128xf32> to vector<8x128xf32>
    %45 = vector.shape_cast %42 : vector<8x128xf32> to vector<1x8x128xf32>
    tpu.vector_store %arg4[%c0_11, %c0_12, %c0_13], %45 {strides = array<i32>} : memref<1x8x128xf32, #tpu.memory_space<vmem>>, vector<1x8x128xf32>,
    return
  }
  func.func @transform_0(%arg0: i32) -> i32 {
    %c0_i32 = arith.constant 0 : i32
    %c0_i32_0 = arith.constant 0 : i32
    return %c0_i32 : i32
  }
  func.func @transform_1(%arg0: i32) -> (i32, i32) {
    %c0_i32 = arith.constant 0 : i32
    %c0_i32_0 = arith.constant 0 : i32
    return %arg0, %c0_i32 : i32, i32
  }
  func.func @transform_2(%arg0: i32) -> (i32, i32, i32) {
    %c0_i32 = arith.constant 0 : i32
    %c0_i32_0 = arith.constant 0 : i32
    %c0_i32_1 = arith.constant 0 : i32
    return %c0_i32, %arg0, %c0_i32_0 : i32, i32, i32
  }
  func.func @transform_3(%arg0: i32) -> (i32, i32, i32) {
    %c0_i32 = arith.constant 0 : i32
    %c0_i32_0 = arith.constant 0 : i32
    %c0_i32_1 = arith.constant 0 : i32
    return %arg0, %c0_i32, %c0_i32_0 : i32, i32, i32
  }
}

</mosaic_0001>

<bundles_post_ra>
// kernel: forward_packed.1
= control target key start
LH: loop header
LB: loop body
LE: loop exit
PB: predicated region body
PF: predicated region fallthrough
CT: control target
= control target key end

     0   :  { %8 = vsyncpa [#allocation3], 0  ;;  %s1568_s0 = inlined_call_operand.vmem [shape: f32[4], index: 0, kind: input, shape index: {}]   ;;  %s1569_s1 = inlined_call_operand.vmem [shape: f32[128,4], index: 1, kind: input, shape index: {}]   ;;  %s1570_s2 = inlined_call_operand.vmem [shape: bf16[3,128,128], index: 2, kind: input, shape index: {}]   ;;  %s1571_s3 = inlined_call_operand.vmem [shape: f32[1,8,128], index: 3, kind: output, shape index: {}]  }
   0x1   :  { %s15_s14 = sshll.u32 %s1568_s0, 4  ;;  %s16_s14 = int_to_ptr.vmem [resolvable:$true] %s15_s14 }
   0x2   :  { %s883_s15 = scalar_lea.vmem %s16_s14, 16  ;;  %p888_p1 = scmp.lt.s32.totalorder %s16_s14, %s16_s14 }
   0x3   :  { %p884_p0 = scmp.ne.s32.totalorder %s16_s14, %s883_s15  ;;  %p889_p2 = scmp.lt.s32.totalorder %s883_s15, %s883_s15 }
   0x5   :  { %p890_p3 = por %p889_p2, %p888_p1 }
   0x7   :  { %p891_p4 = pnand %p890_p3, %p884_p0 }
   0x9   :  { %894 = shalt.err (!%p891_p4)
}
   0xa   :  { %s897_s16 = smov [#allocation2]  }
   0xb   :  { %18 = dma.vmem_to_smem %s16_s14, 16, %s897_s16, [#allocation3]  }
   0xc   :  { %895 = dma.done.wait [#allocation3], 16  }
   0xd   :  { %896 = vsyncadd [#allocation3], 4294967280 }
   0xe   :  { %26 = sfence }
   0xf   :  { %v928_v0 = vld [vmem:[%s1569_s1 + $0x10] sm:$0xff]  ;;  %v933_v1 = vld [vmem:[%s1569_s1] sm:$0xff]  ;;  %v898_v2 = vmov 0   ;;  %v940_v3 = vld [vmem:[%s1569_s1 + $0x18] sm:$0xff]  ;;  %v899_v17 = vmov 1   ;;  %v900_v18 = vmov 2  }
  0x10   :  { %842 = vset.pattern.permute.xlu1 %v898_v2  ;;  %841 = vset.pattern.permute.xlu0 %v898_v2  ;;  %v126_v4 = vld [vmem:[%s1569_s1 + $0x8] sm:$0xff]  ;;  %v129_v6 = vld [vmem:[%s1569_s1 + $0x20] sm:$0xff]  ;;  %v132_v7 = vld [vmem:[%s1569_s1 + $0x38] sm:$0xff]  ;;  %v901_v19 = vmov 3   ;;  %s509_s23 = sld [smem:[#allocation2]]  ;;  %s714_s24 = sld [smem:[#allocation2 + $0x1]] }
  0x11   :  { %153 = vperm.xlu1 %842, %v928_v0   ;;  %143 = vperm.xlu0 %841, %v933_v1   ;;  %v130_v5 = vld [vmem:[%s1569_s1 + $0x28] sm:$0xff]  ;;  %v131_v8 = vld [vmem:[%s1569_s1 + $0x30] sm:$0xff]  ;;  %v133_v10 = vld [vmem:[%s1569_s1 + $0x40] sm:$0xff]  ;;  %s1065_s29 = sld [smem:[#allocation2 + $0x2]]  ;;  %s1169_s17 = sld [smem:[#allocation2 + $0x3]] }
  0x12   :  { %v134_v9 = vld [vmem:[%s1569_s1 + $0x48] sm:$0xff]  ;;  %v136_v11 = vld [vmem:[%s1569_s1 + $0x58] sm:$0xff]  ;;  %v135_v12 = vld [vmem:[%s1569_s1 + $0x50] sm:$0xff] }
  0x13   :  { %v138_v13 = vld [vmem:[%s1569_s1 + $0x68] sm:$0xff]  ;;  %v137_v14 = vld [vmem:[%s1569_s1 + $0x60] sm:$0xff]  ;;  %v140_v15 = vld [vmem:[%s1569_s1 + $0x78] sm:$0xff] }
  0x14   :  { %v982_v16 = vld [vmem:[%s1569_s1 + $0x70] sm:$0xff]  ;;  %v1026_v34 = vld [vmem:[%s1570_s2] sm:$0xff]   ;;  %v1058_v51 = vld [vmem:[%s1570_s2 + $0x8] sm:$0xff]  }
  0x15   :  { %158 = vperm.xlu1 %842, %v940_v3   ;;  %148 = vperm.xlu0 %841, %v126_v4   ;;  %v1031_v35 = vld [vmem:[%s1570_s2 + $0x40] sm:$0xff]   ;;  %v720_v38 = vunpack.c.h.bf16 %v1026_v34  ;;  %v1063_v52 = vld [vmem:[%s1570_s2 + $0x10] sm:$0xff]   ;;  %v1578_v53 = vunpack.c.l.bf16 %v1058_v51  ;;  %v1071_v54 = vld [vmem:[%s1570_s2 + $0x18] sm:$0xff]   ;;  %v1579_v58 = vunpack.c.l.bf16 %v1026_v34  ;;  %v1576_v60 = vunpack.c.h.bf16 %v1058_v51 }
  0x16   :  { %v752_v39 = vunpack.c.h.bf16 %v1031_v35  ;;  %v1077_v57 = vstv %s509_s23  ;;  %v1575_v61 = vunpack.c.h.bf16 %v1063_v52  ;;  %v1577_v62 = vunpack.c.l.bf16 %v1063_v52  ;;  %v1089_v63 = vld [vmem:[%s1570_s2 + $0x20] sm:$0xff]  }
  0x17   :  { %1609 = vst [vmem:[#allocation16_spill] sm:$0xff] %v1077_v57  ;;  %v513_v59 = vmul.f32 %v1578_v53, %v1077_v57  ;;  %1610 = vst [vmem:[#allocation17_spill] sm:$0xff] %v1089_v63  ;;  %v1573_v2 = vunpack.c.l.bf16 %v1071_v54 }
  0x19   :  { %168 = vperm.xlu1 %842, %v130_v5   ;;  %163 = vperm.xlu0 %841, %v129_v6  }
  0x1d   :  { %178 = vperm.xlu1 %842, %v132_v7   ;;  %173 = vperm.xlu0 %841, %v131_v8  }
  0x21   :  { %188 = vperm.xlu1 %842, %v134_v9   ;;  %183 = vperm.xlu0 %841, %v133_v10  }
  0x25   :  { %198 = vperm.xlu1 %842, %v136_v11   ;;  %193 = vperm.xlu0 %841, %v135_v12  }
  0x29   :  { %208 = vperm.xlu1 %842, %v138_v13   ;;  %203 = vperm.xlu0 %841, %v137_v14  }
  0x2d   :  { %218 = vperm.xlu1 %842, %v140_v15   ;;  %213 = vperm.xlu0 %841, %v982_v16  }
  0x31   :  { %844 = vset.pattern.permute.xlu1 %v899_v17  ;;  %843 = vset.pattern.permute.xlu0 %v899_v17  ;;  %v1146_v17 = vld [vmem:[%s1570_s2 + $0x50] sm:$0xff]  }
  0x32   :  { %242 = vperm.xlu1 %844, %v126_v4   ;;  %238 = vperm.xlu0 %843, %v933_v1  }
  0x36   :  { %246 = vperm.xlu1 %844, %v928_v0   ;;  %250 = vperm.xlu0 %843, %v940_v3  }
  0x3a   :  { %254 = vperm.xlu1 %844, %v129_v6   ;;  %258 = vperm.xlu0 %843, %v130_v5  }
  0x3e   :  { %262 = vperm.xlu1 %844, %v131_v8   ;;  %266 = vperm.xlu0 %843, %v132_v7  }
  0x42   :  { %270 = vperm.xlu1 %844, %v133_v10   ;;  %274 = vperm.xlu0 %843, %v134_v9  }
  0x46   :  { %278 = vperm.xlu1 %844, %v135_v12   ;;  %282 = vperm.xlu0 %843, %v136_v11  }
  0x4a   :  { %286 = vperm.xlu1 %844, %v137_v14   ;;  %290 = vperm.xlu0 %843, %v138_v13  }
  0x4e   :  { %294 = vperm.xlu1 %844, %v982_v16   ;;  %298 = vperm.xlu0 %843, %v140_v15  }
  0x52   :  { %845 = vset.pattern.permute.xlu1 %v900_v18  ;;  %846 = vset.pattern.permute.xlu0 %v900_v18 }
  0x53   :  { %334 = vperm.xlu1 %845, %v933_v1   ;;  %338 = vperm.xlu0 %846, %v126_v4  }
  0x57   :  { %342 = vperm.xlu1 %845, %v928_v0   ;;  %350 = vperm.xlu0 %846, %v129_v6  }
  0x5b   :  { %346 = vperm.xlu1 %845, %v940_v3   ;;  %358 = vperm.xlu0 %846, %v131_v8  }
  0x5f   :  { %354 = vperm.xlu1 %845, %v130_v5   ;;  %848 = vset.pattern.permute.xlu0 %v901_v19 }
  0x60   :  { %434 = vperm.xlu0 %848, %v126_v4   ;;  %v1101_v4 = vstv %s714_s24 }
  0x63   :  { %847 = vset.pattern.permute.xlu1 %v901_v19 }
  0x64   :  { %430 = vperm.xlu1 %847, %v933_v1   ;;  %446 = vperm.xlu0 %848, %v129_v6   ;;  %v1572_v1 = vunpack.c.h.bf16 %v1071_v54  ;;  %v1111_v6 = vmul.f32 %v1576_v60, %v1077_v57 }
  0x68   :  { %438 = vperm.xlu1 %847, %v928_v0   ;;  %450 = vperm.xlu0 %848, %v130_v5   ;;  %v511_v0 = vmul.f32 %v1579_v58, %v1077_v57  ;;  %v1106_v5 = vld [vmem:[%s1570_s2 + $0x80] sm:$0xff]   ;;  %v1190_v58 = vld [vmem:[%s1570_s2 + $0x90] sm:$0xff]  }
  0x6c   :  { %442 = vperm.xlu1 %847, %v940_v3   ;;  %454 = vperm.xlu0 %848, %v131_v8   ;;  %v1099_v3 = vld [vmem:[%s1570_s2 + $0x28] sm:$0xff]   ;;  %v1117_v8 = vmul.f32 %v1575_v61, %v1077_v57  ;;  %v1584_v61 = vunpack.c.l.bf16 %v1106_v5 }
  0x6d   :  { %1611 = vst [vmem:[#allocation18_spill] sm:$0xff] %v1099_v3  ;;  %v1619_v60 = vunpack.c.l.bf16 %v1099_v3 }
  0x70   :  { %849 = vset.pattern.permute.xlu1 %v900_v18  ;;  %458 = vperm.xlu0 %848, %v132_v7   ;;  %v1580_v18 = vunpack.c.l.bf16 %v1089_v63 }
  0x71   :  { %362 = vperm.xlu1 %849, %v132_v7   ;;  %v512_v7 = vmul.f32 %v720_v38, %v1077_v57 }
  0x74   :  { %462 = vperm.xlu0 %848, %v133_v10  }
  0x75   :  { %366 = vperm.xlu1 %849, %v133_v10   ;;  %v1125_v10 = vld [vmem:[%s1570_s2 + $0x48] sm:$0xff]  }
  0x78   :  { %466 = vperm.xlu0 %848, %v134_v9  }
  0x79   :  { %370 = vperm.xlu1 %849, %v134_v9   ;;  %v515_v9 = vmul.f32 %v1577_v62, %v1077_v57 }
  0x7c   :  { %470 = vperm.xlu0 %848, %v135_v12  }
  0x7d   :  { %374 = vperm.xlu1 %849, %v135_v12  }
  0x80   :  { %474 = vperm.xlu0 %848, %v136_v11  }
  0x81   :  { %378 = vperm.xlu1 %849, %v136_v11  }
  0x84   :  { %478 = vperm.xlu0 %848, %v137_v14  }
  0x85   :  { %382 = vperm.xlu1 %849, %v137_v14   ;;  %v1139_v14 = vmul.f32 %v1573_v2, %v1077_v57  ;;  %v1167_v2 = vstv %s1065_s29 }
  0x88   :  { %482 = vperm.xlu0 %848, %v138_v13  }
  0x89   :  { %386 = vperm.xlu1 %849, %v138_v13   ;;  %v1134_v13 = vmul.f32 %v1572_v1, %v1077_v57  ;;  %v1583_v1 = vunpack.c.l.bf16 %v1125_v10 }
  0x8c   :  { %490 = vperm.xlu0 %848, %v140_v15  }
  0x8d   :  { %390 = vperm.xlu1 %849, %v982_v16  }
  0x90   :  { %v996_v20 = vpop.permute.xlu1 %153  ;;  %v998_v21 = vpop.permute.xlu0 %143 }
  0x91   :  { %394 = vperm.xlu1 %849, %v140_v15   ;;  %v1574_v15 = vunpack.c.h.bf16 %v1089_v63 }
  0x94   :  { %v1000_v22 = vpop.permute.xlu1 %158  ;;  %v149_v23 = vpop.permute.xlu0 %148 }
  0x95   :  { %850 = vset.pattern.permute.xlu1 %v901_v19  ;;  %v222_v42 = vmul.f32 %v720_v38, %v149_v23  ;;  %v1582_v19 = vunpack.c.h.bf16 %v1099_v3  ;;  %v1153_v23 = vld [vmem:[%s1570_s2 + $0x30] sm:$0xff]   ;;  %v530_v38 = vmul.f32 %v752_v39, %v1101_v4 }
  0x96   :  { %486 = vperm.xlu1 %850, %v982_v16   ;;  %v1581_v16 = vunpack.c.l.bf16 %v1031_v35  ;;  %1614 = vst [vmem:[#allocation21_spill] sm:$0xff] %v1153_v23 }
  0x98   :  { %v1003_v24 = vpop.permute.xlu1 %168  ;;  %v1005_v25 = vpop.permute.xlu0 %163 }
  0x9c   :  { %v1007_v26 = vpop.permute.xlu1 %178  ;;  %v1009_v27 = vpop.permute.xlu0 %173 }
  0x9d   :  { %1598 = vst [vmem:[#allocation5_spill] sm:$0xff] %v1007_v26 }
  0xa0   :  { %v1011_v28 = vpop.permute.xlu1 %188  ;;  %v1013_v29 = vpop.permute.xlu0 %183 }
  0xa1   :  { %1599 = vst [vmem:[#allocation6_spill] sm:$0xff] %v1011_v28  ;;  %1600 = vst [vmem:[#allocation7_spill] sm:$0xff] %v1013_v29 }
  0xa4   :  { %v1015_v30 = vpop.permute.xlu1 %198  ;;  %v1017_v31 = vpop.permute.xlu0 %193 }
  0xa5   :  { %1601 = vst [vmem:[#allocation8_spill] sm:$0xff] %v1015_v30  ;;  %1602 = vst [vmem:[#allocation9_spill] sm:$0xff] %v1017_v31 }
  0xa8   :  { %v1019_v32 = vpop.permute.xlu1 %208  ;;  %v1021_v33 = vpop.permute.xlu0 %203 }
  0xa9   :  { %1603 = vst [vmem:[#allocation10_spill] sm:$0xff] %v1019_v32  ;;  %1604 = vst [vmem:[#allocation11_spill] sm:$0xff] %v1021_v33  ;;  %v1205_v32 = vld [vmem:[%s1570_s2 + $0x58] sm:$0xff]   ;;  %v1223_v33 = vmul.f32 %v1619_v60, %v1077_v57 }
  0xaa   :  { %v1589_v3 = vunpack.c.l.bf16 %v1205_v32 }
  0xac   :  { %v1033_v36 = vpop.permute.xlu1 %218  ;;  %v1035_v37 = vpop.permute.xlu0 %213 }
  0xad   :  { %1605 = vst [vmem:[#allocation12_spill] sm:$0xff] %v1033_v36  ;;  %1606 = vst [vmem:[#allocation13_spill] sm:$0xff] %v1035_v37  ;;  %v1617_v37 = vunpack.c.l.bf16 %v1146_v17 }
  0xaf   :  { %v533_v36 = vmul.f32 %v1617_v37, %v1101_v4  ;;  %v1217_v37 = vld [vmem:[%s1570_s2 + $0x88] sm:$0xff]  }
  0xb0   :  { %v1591_v28 = vunpack.c.l.bf16 %v1217_v37  ;;  %v1631_v29 = vunpack.c.h.bf16 %v1217_v37 }
  0xb1   :  { %v243_v40 = vpop.permute.xlu1 %242  ;;  %v1039_v41 = vpop.permute.xlu0 %238  ;;  %v549_v31 = vadd.f32 %v533_v36, %v515_v9  ;;  %v1263_v36 = vstv %s1169_s17 }
  0xb2   :  { %v302_v43 = vmul.f32 %v752_v39, %v243_v40  ;;  %v1174_v39 = vmul.f32 %v1580_v18, %v1077_v57  ;;  %v546_v40 = vadd.f32 %v530_v38, %v512_v7  ;;  %v563_v7 = vmul.f32 %v1584_v61, %v1167_v2 }
  0xb4   :  { %v1041_v44 = vadd.f32 %v302_v43, %v222_v42  ;;  %v1160_v42 = vmul.f32 %v1574_v15, %v1077_v57  ;;  %v529_v43 = vmul.f32 %v1581_v16, %v1101_v4  ;;  %v1179_v15 = vmul.f32 %v1582_v19, %v1077_v57 }
  0xb5   :  { %v1043_v45 = vpop.permute.xlu1 %246  ;;  %v1045_v46 = vpop.permute.xlu0 %250  ;;  %v531_v19 = vmul.f32 %v1583_v1, %v1101_v4  ;;  %v1618_v16 = vunpack.c.h.bf16 %v1106_v5  ;;  %v1624_v1 = vunpack.c.h.bf16 %v1125_v10 }
  0xb7   :  { %v564_v18 = vmul.f32 %v1618_v16, %v1167_v2  ;;  %v532_v38 = vmul.f32 %v1624_v1, %v1101_v4  ;;  %v547_v60 = vadd.f32 %v531_v19, %v513_v59  ;;  %v1252_v1 = vld [vmem:[%s1570_s2 + $0x98] sm:$0xff]   ;;  %v535_v59 = vmul.f32 %v1589_v3, %v1101_v4 }
  0xb8   :  { %v565_v3 = vmul.f32 %v1591_v28, %v1167_v2  ;;  %v1630_v28 = vunpack.c.h.bf16 %v1190_v58 }
  0xb9   :  { %v1047_v47 = vpop.permute.xlu1 %254  ;;  %v1049_v48 = vpop.permute.xlu0 %258 }
  0xbd   :  { %v1051_v49 = vpop.permute.xlu1 %262  ;;  %v1053_v50 = vpop.permute.xlu0 %266 }
  0xc1   :  { %v1073_v55 = vpop.permute.xlu1 %270  ;;  %v1075_v56 = vpop.permute.xlu0 %274 }
  0xc2   :  { %1607 = vst [vmem:[#allocation14_spill] sm:$0xff] %v1073_v55  ;;  %1608 = vst [vmem:[#allocation15_spill] sm:$0xff] %v1075_v56  ;;  %v581_v55 = vadd.f32 %v565_v3, %v547_v60  ;;  %v1318_v3 = vld [vmem:[%s1570_s2 + $0xa0] sm:$0xff]  }
  0xc5   :  { %v1127_v11 = vpop.permute.xlu1 %278  ;;  %v1129_v12 = vpop.permute.xlu0 %282 }
  0xc6   :  { %1612 = vst [vmem:[#allocation19_spill] sm:$0xff] %v1127_v11  ;;  %1613 = vst [vmem:[#allocation20_spill] sm:$0xff] %v1129_v12  ;;  %v1627_v12 = vunpack.c.h.bf16 %v1146_v17  ;;  %v580_v11 = vadd.f32 %v564_v18, %v546_v40  ;;  %v1628_v18 = vunpack.c.l.bf16 %v1190_v58 }
  0xc8   :  { %v567_v19 = vmul.f32 %v1628_v18, %v1167_v2  ;;  %v598_v63 = vadd.f32 %v1263_v36, %v580_v11 }
  0xc9   :  { %v1183_v62 = vpop.permute.xlu1 %286  ;;  %v1185_v53 = vpop.permute.xlu0 %290 }
  0xca   :  { %1615 = vst [vmem:[#allocation22_spill] sm:$0xff] %v1183_v62  ;;  %1616 = vst [vmem:[#allocation23_spill] sm:$0xff] %v1185_v53  ;;  %v545_v53 = vadd.f32 %v529_v43, %v511_v0  ;;  %v1620_v0 = vunpack.c.h.bf16 %v1153_v23  ;;  %v1622_v43 = vunpack.c.l.bf16 %v1153_v23  ;;  %851 = vrcp.f32 %v598_v63 }
  0xcc   :  { %v1228_v16 = vmul.f32 %v1620_v0, %v1077_v57  ;;  %v1233_v61 = vmul.f32 %v1622_v43, %v1077_v57  ;;  %v534_v0 = vmul.f32 %v1627_v12, %v1101_v4  ;;  %v1590_v43 = vunpack.c.h.bf16 %v1205_v32  ;;  %v1260_v12 = vld [vmem:[%s1570_s2 + $0x60] sm:$0xff]  }
  0xcd   :  { %v1238_v62 = vpop.permute.xlu1 %294  ;;  %v1240_v30 = vpop.permute.xlu0 %298  ;;  %v579_v9 = vadd.f32 %v563_v7, %v545_v53  ;;  %v1279_v53 = vld [vmem:[%s1570_s2 + $0x38] sm:$0xff]   ;;  %v548_v7 = vadd.f32 %v532_v38, %v1111_v6  ;;  %v566_v6 = vmul.f32 %v1631_v29, %v1167_v2  ;;  %v1297_v38 = vld [vmem:[%s1570_s2 + $0x68] sm:$0xff]   ;;  %v1632_v29 = vunpack.c.h.bf16 %v1252_v1 }
  0xce   :  { %1621 = vst [vmem:[#allocation24_spill] sm:$0xff] %v1228_v16  ;;  %1623 = vst [vmem:[#allocation25_spill] sm:$0xff] %v1233_v61  ;;  %v536_v40 = vmul.f32 %v1590_v43, %v1101_v4  ;;  %v550_v18 = vadd.f32 %v534_v0, %v1117_v8  ;;  %v1594_v43 = vunpack.c.l.bf16 %v1252_v1  ;;  %v568_v16 = vmul.f32 %v1630_v28, %v1167_v2 }
  0xcf   :  { %1625 = vst [vmem:[#allocation26_spill] sm:$0xff] %v1238_v62  ;;  %1626 = vst [vmem:[#allocation27_spill] sm:$0xff] %v1240_v30  ;;  %v551_v8 = vadd.f32 %v535_v59, %v1139_v14  ;;  %v597_v0 = vadd.f32 %v1263_v36, %v579_v9  ;;  %v583_v28 = vadd.f32 %v567_v19, %v549_v31  ;;  %v1633_v61 = vunpack.c.l.bf16 %v1260_v12 }
  0xd0   :  { %1629 = vst [vmem:[#allocation28_spill] sm:$0xff] %v1279_v53  ;;  %v569_v62 = vmul.f32 %v1594_v43, %v1167_v2  ;;  %v552_v23 = vadd.f32 %v536_v40, %v1134_v13  ;;  %v570_v14 = vmul.f32 %v1632_v29, %v1167_v2  ;;  %v1634_v31 = vunpack.c.h.bf16 %v1260_v12 }
  0xd1   :  { %v537_v9 = vmul.f32 %v1633_v61, %v1101_v4  ;;  %v584_v11 = vadd.f32 %v568_v16, %v550_v18  ;;  %v1635_v13 = vunpack.c.h.bf16 %v1279_v53  ;;  %v582_v61 = vadd.f32 %v566_v6, %v548_v7  ;;  %v1330_v16 = vld [vmem:[%s1570_s2 + $0x70] sm:$0xff]  }
  0xd2   :  { %v335_v30 = vpop.permute.xlu1 %334  ;;  %v339_v56 = vpop.permute.xlu0 %338  ;;  %v538_v19 = vmul.f32 %v1634_v31, %v1101_v4  ;;  %853 = vrcp.f32 %v597_v0  ;;  %v601_v18 = vadd.f32 %v1263_v36, %v583_v28  ;;  %v585_v31 = vadd.f32 %v569_v62, %v551_v8 }
  0xd3   :  { %v1323_v60 = vmul.f32 %v1635_v13, %v1077_v57  ;;  %v599_v59 = vadd.f32 %v1263_v36, %v581_v55  ;;  %v586_v53 = vadd.f32 %v570_v14, %v552_v23  ;;  %v799_v13 = vunpack.c.l.bf16 %v1318_v3 }
  0xd4   :  { %v800_v40 = vunpack.c.h.bf16 %v1318_v3  ;;  %v553_v63 = vadd.f32 %v537_v9, %v1174_v39  ;;  %v554_v7 = vadd.f32 %v538_v19, %v1160_v42  ;;  %v1637_v6 = vunpack.c.h.bf16 %v1106_v5 }
  0xd5   :  { %1636 = vst [vmem:[#allocation29_spill] sm:$0xff] %v1323_v60  ;;  %v602_v0 = vadd.f32 %v1263_v36, %v584_v11  ;;  %v1638_v55 = vunpack.c.l.bf16 %v1297_v38  ;;  %v1639_v23 = vunpack.c.h.bf16 %v1297_v38  ;;  %v775_v39 = vunpack.c.l.bf16 %v1330_v16 }
  0xd6   :  { %v343_v43 = vpop.permute.xlu1 %342  ;;  %v351_v26 = vpop.permute.xlu0 %350  ;;  %v398_v29 = vmul.f32 %v1637_v6, %v339_v56  ;;  %v600_v42 = vadd.f32 %v1263_v36, %v582_v61  ;;  %v1640_v56 = vunpack.c.l.bf16 %v1031_v35  ;;  %v776_v14 = vunpack.c.h.bf16 %v1330_v16 }
  0xd7   :  { %v539_v62 = vmul.f32 %v1638_v55, %v1101_v4  ;;  %v540_v8 = vmul.f32 %v1639_v23, %v1101_v4  ;;  %855 = vrcp.f32 %v601_v18  ;;  %v603_v11 = vadd.f32 %v1263_v36, %v585_v31 }
  0xd8   :  { %v301_v28 = vmul.f32 %v1640_v56, %v1039_v41  ;;  %857 = vrcp.f32 %v599_v59  ;;  %v604_v9 = vadd.f32 %v1263_v36, %v586_v53  ;;  %v571_v19 = vmul.f32 %v799_v13, %v1167_v2 }
  0xd9   :  { %v572_v61 = vmul.f32 %v800_v40, %v1167_v2  ;;  %v1641_v35 = vunpack.c.l.bf16 %v1026_v34  ;;  %v1642_v6 = vunpack.c.l.bf16 %v1106_v5  ;;  %859 = vrcp.f32 %v602_v0 }
  0xda   :  { %v347_v60 = vpop.permute.xlu1 %346  ;;  %v1340_v57 = vpop.permute.xlu0 %358  ;;  %v414_v59 = vadd.f32 %v398_v29, %v1041_v44  ;;  %v1370_v53 = vadd.f32 %v539_v62, %v1223_v33  ;;  %v1373_v31 = vadd.f32 %v540_v8, %v1179_v15  ;;  %v1378_v23 = vmul.f32 %v775_v39, %v1101_v4 }
  0xdb   :  { %v221_v41 = vmul.f32 %v1641_v35, %v998_v21  ;;  %v397_v18 = vmul.f32 %v1642_v6, %v335_v30  ;;  %861 = vrcp.f32 %v600_v42  ;;  %v1383_v30 = vld [vmem:[%s1570_s2 + $0xa8] sm:$0xff]   ;;  %v1643_v33 = vunpack.c.l.bf16 %v1125_v10  ;;  %v852_v15 = vpop.eup %851 }
  0xdc   :  { %863 = vrcp.f32 %v603_v11  ;;  %v1644_v29 = vunpack.c.l.bf16 %v1146_v17  ;;  %v587_v62 = vadd.f32 %v571_v19, %v553_v63  ;;  %v588_v8 = vadd.f32 %v572_v61, %v554_v7  ;;  %v854_v42 = vpop.eup %853 }
  0xdd   :  { %v317_v34 = vadd.f32 %v301_v28, %v221_v41  ;;  %v303_v44 = vmul.f32 %v1643_v33, %v1043_v45  ;;  %865 = vrcp.f32 %v604_v9  ;;  %v1645_v56 = vunpack.c.l.bf16 %v1058_v51 }
  0xde   :  { %v355_v55 = vpop.permute.xlu1 %354  ;;  %v305_v0 = vmul.f32 %v1644_v29, %v1047_v47  ;;  %v1646_v28 = vunpack.c.l.bf16 %v1217_v37  ;;  %v803_v45 = vunpack.c.l.bf16 %v1383_v30  ;;  %v1647_v11 = vunpack.c.l.bf16 %v1063_v52 }
  0xdf   :  { %v435_v21 = vpop.permute.xlu0 %434  ;;  %v223_v35 = vmul.f32 %v1645_v56, %v996_v20  ;;  %v413_v6 = vadd.f32 %v397_v18, %v317_v34  ;;  %v1648_v47 = vunpack.c.h.bf16 %v1125_v10  ;;  %v1649_v7 = vunpack.c.h.bf16 %v1146_v17 }
  0xe0   :  { %v494_v5 = vadd.f32 %v435_v21, %v414_v59  ;;  %v399_v41 = vmul.f32 %v1646_v28, %v343_v43  ;;  %v225_v59 = vmul.f32 %v1647_v11, %v1005_v25  ;;  %v1650_v20 = vunpack.c.l.bf16 %v1190_v58 }
  0xe1   :  { %v304_v63 = vmul.f32 %v1648_v47, %v1045_v46  ;;  %v306_v9 = vmul.f32 %v1649_v7, %v1049_v48  ;;  %v1651_v18 = vunpack.c.h.bf16 %v1058_v51  ;;  %v319_v34 = vadd.f32 %v303_v44, %v223_v35  ;;  %v856_v28 = vpop.eup %855  ;;  %v1433_v47 = vld [vmem:[%s1570_s2 + $0xb0] sm:$0xff]  }
  0xe2   :  { %v401_v19 = vmul.f32 %v1650_v20, %v351_v26  ;;  %v630_v33 = vmul.f32 %v852_v15, %v494_v5  ;;  %v1652_v10 = vunpack.c.h.bf16 %v1063_v52  ;;  %v321_v29 = vadd.f32 %v305_v0, %v225_v59  ;;  %v858_v52 = vpop.eup %857 }
  0xe3   :  { %v431_v61 = vpop.permute.xlu1 %430  ;;  %v447_v43 = vpop.permute.xlu0 %446  ;;  %v224_v21 = vmul.f32 %v1651_v18, %v1000_v22  ;;  %v1653_v48 = vunpack.c.l.bf16 %v1205_v32  ;;  %v1654_v26 = vunpack.c.h.bf16 %v1217_v37  ;;  %v1655_v11 = vunpack.c.h.bf16 %v1190_v58 }
  0xe4   :  { %v493_v25 = vadd.f32 %v431_v61, %v413_v6  ;;  %v226_v46 = vmul.f32 %v1652_v10, %v1003_v24  ;;  %v415_v44 = vadd.f32 %v399_v41, %v319_v34  ;;  %v573_v5 = vmul.f32 %v803_v45, %v1167_v2  ;;  %v860_v6 = vpop.eup %859 }
  0xe5   :  { %v307_v17 = vmul.f32 %v1653_v48, %v1051_v49  ;;  %v400_v56 = vmul.f32 %v1654_v26, %v347_v60  ;;  %v402_v51 = vmul.f32 %v1655_v11, %v355_v55  ;;  %v1656_v24 = vunpack.c.l.bf16 %v1071_v54  ;;  %v862_v7 = vpop.eup %861 }
  0xe6   :  { %v629_v22 = vmul.f32 %v854_v42, %v493_v25  ;;  %v320_v0 = vadd.f32 %v304_v63, %v224_v21  ;;  %v322_v49 = vadd.f32 %v306_v9, %v226_v46  ;;  %v417_v35 = vadd.f32 %v401_v19, %v321_v29  ;;  %v864_v19 = vpop.eup %863 }
  0xe7   :  { %v227_v15 = vmul.f32 %v1656_v24, %v1009_v27  ;;  %v439_v37 = vpop.permute.xlu1 %438  ;;  %v451_v60 = vpop.permute.xlu0 %450  ;;  %v1657_v58 = vunpack.c.l.bf16 %v1252_v1  ;;  %v646_v42 = vand.u32 2147483647, %v630_v33  ;;  %v605_v9 = vadd.f32 %v1263_v36, %v587_v62  ;;  %v1659_v24 = vld [vmem:[#allocation5_spill] sm:$0xff] }
  0xe8   :  { %v645_v41 = vand.u32 2147483647, %v629_v22  ;;  %v495_v59 = vadd.f32 %v439_v37, %v415_v44  ;;  %v416_v63 = vadd.f32 %v400_v56, %v320_v0  ;;  %v804_v20 = vunpack.c.h.bf16 %v1383_v30  ;;  %v866_v33 = vpop.eup %865 }
  0xe9   :  { %v403_v55 = vmul.f32 %v1657_v58, %v1340_v57  ;;  %v323_v27 = vadd.f32 %v307_v17, %v227_v15  ;;  %v1440_v57 = vld [vmem:[%s1570_s2 + $0x78] sm:$0xff]   ;;  %v497_v18 = vadd.f32 %v447_v43, %v417_v35  ;;  %v418_v34 = vadd.f32 %v402_v51, %v322_v49  ;;  %v1661_v49 = vld [vmem:[#allocation25_spill] sm:$0xff] }
  0xea   :  { %v661_v61 = vadd.f32 %v646_v42, %v645_v41  ;;  %v631_v21 = vmul.f32 %v858_v52, %v495_v59  ;;  %v542_v25 = vmul.f32 %v776_v14, %v1101_v4  ;;  %v606_v62 = vadd.f32 %v1263_v36, %v588_v8  ;;  %v1662_v41 = vld [vmem:[#allocation14_spill] sm:$0xff] }
  0xeb   :  { %v443_v10 = vpop.permute.xlu1 %442  ;;  %v455_v46 = vpop.permute.xlu0 %454  ;;  %v589_v29 = vadd.f32 %v573_v5, %v1370_v53  ;;  %v807_v48 = vunpack.c.l.bf16 %v1433_v47  ;;  %v498_v26 = vadd.f32 %v451_v60, %v418_v34  ;;  %v419_v11 = vadd.f32 %v403_v55, %v323_v27 }
  0xec   :  { %v647_v17 = vand.u32 2147483647, %v631_v21  ;;  %v496_v56 = vadd.f32 %v443_v10, %v416_v63  ;;  %v1658_v43 = vunpack.c.h.bf16 %v1205_v32  ;;  %v779_v22 = vunpack.c.l.bf16 %v1440_v57  ;;  %v1666_v21 = vld [vmem:[#allocation17_spill] sm:$0xff] }
  0xed   :  { %867 = vrcp.f32 %v605_v9  ;;  %v574_v44 = vmul.f32 %v804_v20, %v1167_v2  ;;  %v633_v8 = vmul.f32 %v856_v28, %v497_v18  ;;  %v499_v5 = vadd.f32 %v455_v46, %v419_v11  ;;  %v1665_v18 = vld [vmem:[#allocation7_spill] sm:$0xff]  ;;  %v1668_v46 = vld [vmem:[#allocation24_spill] sm:$0xff] }
  0xee   :  { %v308_v51 = vmul.f32 %v1658_v43, %v1053_v50  ;;  %v662_v52 = vadd.f32 %v661_v61, %v647_v17  ;;  %v632_v53 = vmul.f32 %v862_v7, %v496_v56  ;;  %v1660_v15 = vunpack.c.h.bf16 %v1071_v54 }
  0xef   :  { %v557_v35 = vadd.f32 %v1378_v23, %v1661_v49  ;;  %v780_v32 = vunpack.c.h.bf16 %v1440_v57  ;;  %v459_v50 = vpop.permute.xlu0 %458  ;;  %v607_v37 = vadd.f32 %v1263_v36, %v589_v29  ;;  %v634_v60 = vmul.f32 %v860_v6, %v498_v26  ;;  %v1669_v26 = vld [vmem:[#allocation15_spill] sm:$0xff]  ;;  %v1673_v49 = vld [vmem:[#allocation16_spill] sm:$0xff] }
  0xf0   :  { %v228_v0 = vmul.f32 %v1660_v15, %v1659_v24  ;;  %v648_v58 = vand.u32 2147483647, %v632_v53  ;;  %v363_v55 = vpop.permute.xlu1 %362  ;;  %869 = vrcp.f32 %v606_v62  ;;  %v575_v28 = vmul.f32 %v807_v48, %v1167_v2  ;;  %v1671_v53 = vld [vmem:[#allocation6_spill] sm:$0xff] }
  0xf1   :  { %v1663_v54 = vunpack.c.l.bf16 %v1260_v12  ;;  %v1664_v23 = vunpack.c.h.bf16 %v1252_v1  ;;  %v590_v27 = vadd.f32 %v574_v44, %v1373_v31  ;;  %v649_v63 = vand.u32 2147483647, %v633_v8 }
  0xf2   :  { %v324_v42 = vadd.f32 %v308_v51, %v228_v0  ;;  %v663_v9 = vadd.f32 %v662_v52, %v648_v58  ;;  %v635_v6 = vmul.f32 %v864_v19, %v499_v5  ;;  %v808_v61 = vunpack.c.h.bf16 %v1433_v47  ;;  %v1695_v47 = vld [vmem:[#allocation12_spill] sm:$0xff] }
  0xf3   :  { %v309_v59 = vmul.f32 %v1663_v54, %v1662_v41  ;;  %v404_v7 = vmul.f32 %v1664_v23, %v363_v55  ;;  %v1667_v34 = vunpack.c.l.bf16 %v1666_v21  ;;  %v558_v62 = vadd.f32 %v542_v25, %v1668_v46  ;;  %v463_v17 = vpop.permute.xlu0 %462  ;;  %v1679_v46 = vld [vmem:[#allocation18_spill] sm:$0xff] }
  0xf4   :  { %871 = vrcp.f32 %v607_v37  ;;  %v1670_v1 = vunpack.c.h.bf16 %v1260_v12  ;;  %v650_v11 = vand.u32 2147483647, %v634_v60  ;;  %v664_v31 = vadd.f32 %v663_v9, %v649_v63  ;;  %v367_v43 = vpop.permute.xlu1 %366 }
  0xf5   :  { %v229_v10 = vmul.f32 %v1667_v34, %v1665_v18  ;;  %v420_v29 = vadd.f32 %v404_v7, %v324_v42  ;;  %v591_v51 = vadd.f32 %v575_v28, %v557_v35  ;;  %v405_v8 = vmul.f32 %v799_v13, %v367_v43  ;;  %v1674_v35 = vld [vmem:[#allocation28_spill] sm:$0xff]  ;;  %v1676_v7 = vld [vmem:[#allocation19_spill] sm:$0xff] }
  0xf6   :  { %v310_v56 = vmul.f32 %v1670_v1, %v1669_v26  ;;  %v608_v52 = vadd.f32 %v1263_v36, %v590_v27  ;;  %v1672_v25 = vunpack.c.h.bf16 %v1666_v21  ;;  %v651_v24 = vand.u32 2147483647, %v635_v6  ;;  %v1497_v28 = vld [vmem:[%s1570_s2 + $0xb8] sm:$0xff]  }
  0xf7   :  { %v325_v19 = vadd.f32 %v309_v59, %v229_v10  ;;  %v500_v44 = vadd.f32 %v459_v50, %v420_v29  ;;  %v665_v15 = vadd.f32 %v664_v31, %v650_v11  ;;  %v576_v12 = vmul.f32 %v808_v61, %v1167_v2  ;;  %v868_v0 = vpop.eup %867  ;;  %v467_v55 = vpop.permute.xlu0 %466  ;;  %v1678_v10 = vld [vmem:[#allocation9_spill] sm:$0xff]  ;;  %v1681_v43 = vld [vmem:[#allocation20_spill] sm:$0xff] }
  0xf8   :  { %v230_v5 = vmul.f32 %v1672_v25, %v1671_v53  ;;  %v1675_v37 = vunpack.c.l.bf16 %v1674_v35  ;;  %v543_v13 = vmul.f32 %v779_v22, %v1101_v4  ;;  %v544_v41 = vmul.f32 %v780_v32, %v1101_v4  ;;  %v371_v59 = vpop.permute.xlu1 %370 }
  0xf9   :  { %v636_v60 = vmul.f32 %v866_v33, %v500_v44  ;;  %v421_v58 = vadd.f32 %v405_v8, %v325_v19  ;;  %v666_v54 = vadd.f32 %v665_v15, %v651_v24  ;;  %v609_v23 = vadd.f32 %v1263_v36, %v591_v51  ;;  %v1683_v51 = vld [vmem:[#allocation29_spill] sm:$0xff] }
  0xfa   :  { %v525_v50 = vmul.f32 %v1675_v37, %v1673_v49  ;;  %v326_v42 = vadd.f32 %v310_v56, %v230_v5  ;;  %v1677_v27 = vunpack.c.l.bf16 %v1297_v38  ;;  %v406_v6 = vmul.f32 %v800_v40, %v371_v59  ;;  %v870_v18 = vpop.eup %869  ;;  %v1684_v5 = vld [vmem:[#allocation8_spill] sm:$0xff] }
  0xfb   :  { %v652_v63 = vand.u32 2147483647, %v636_v60  ;;  %v501_v9 = vadd.f32 %v463_v17, %v421_v58  ;;  %873 = vrcp.f32 %v608_v52  ;;  %v592_v21 = vadd.f32 %v576_v12, %v558_v62  ;;  %v471_v31 = vpop.permute.xlu0 %470  ;;  %v1686_v58 = vld [vmem:[#allocation22_spill] sm:$0xff] }
  0xfc   :  { %v311_v33 = vmul.f32 %v1677_v27, %v1676_v7  ;;  %v811_v34 = vunpack.c.l.bf16 %v1497_v28  ;;  %v812_v4 = vunpack.c.h.bf16 %v1497_v28  ;;  %v1680_v29 = vunpack.c.l.bf16 %v1679_v46  ;;  %v375_v62 = vpop.permute.xlu1 %374  ;;  %v1687_v7 = vld [vmem:[#allocation11_spill] sm:$0xff] }
  0xfd   :  { %v667_v1 = vadd.f32 %v666_v54, %v652_v63  ;;  %v637_v56 = vmul.f32 %v868_v0, %v501_v9  ;;  %v422_v11 = vadd.f32 %v406_v6, %v326_v42  ;;  %v1682_v17 = vunpack.c.h.bf16 %v1297_v38 }
  0xfe   :  { %v231_v26 = vmul.f32 %v1680_v29, %v1678_v10  ;;  %v559_v40 = vadd.f32 %v543_v13, %v525_v50  ;;  %v560_v19 = vadd.f32 %v544_v41, %v1683_v51  ;;  %875 = vrcp.f32 %v609_v23  ;;  %v872_v44 = vpop.eup %871 }
  0xff   :  { %v312_v3 = vmul.f32 %v1682_v17, %v1681_v43  ;;  %v653_v52 = vand.u32 2147483647, %v637_v56  ;;  %v502_v53 = vadd.f32 %v467_v55, %v422_v11  ;;  %v407_v25 = vmul.f32 %v803_v45, %v375_v62  ;;  %v475_v60 = vpop.permute.xlu0 %474 }
 0x100   :  { %v327_v8 = vadd.f32 %v311_v33, %v231_v26  ;;  %v1685_v24 = vunpack.c.h.bf16 %v1679_v46  ;;  %v610_v12 = vadd.f32 %v1263_v36, %v592_v21  ;;  %v577_v38 = vmul.f32 %v811_v34, %v1167_v2  ;;  %v379_v45 = vpop.permute.xlu1 %378  ;;  %v1690_v21 = vld [vmem:[#allocation23_spill] sm:$0xff] }
 0x101   :  { %v578_v0 = vmul.f32 %v812_v4, %v1167_v2  ;;  %v668_v49 = vadd.f32 %v667_v1, %v653_v52  ;;  %v638_v37 = vmul.f32 %v870_v18, %v502_v53  ;;  %v313_v55 = vmul.f32 %v775_v39, %v1686_v58  ;;  %v1688_v2 = vld [vmem:[#allocation21_spill] sm:$0xff] }
 0x102   :  { %v232_v15 = vmul.f32 %v1685_v24, %v1684_v5  ;;  %v423_v50 = vadd.f32 %v407_v25, %v327_v8  ;;  %v408_v54 = vmul.f32 %v804_v20, %v379_v45  ;;  %877 = vrcp.f32 %v610_v12  ;;  %v1693_v5 = vld [vmem:[#allocation27_spill] sm:$0xff] }
 0x103   :  { %v654_v42 = vand.u32 2147483647, %v638_v37  ;;  %v593_v59 = vadd.f32 %v577_v38, %v559_v40  ;;  %v594_v23 = vadd.f32 %v578_v0, %v560_v19  ;;  %v1689_v27 = vunpack.c.l.bf16 %v1688_v2  ;;  %v479_v1 = vpop.permute.xlu0 %478  ;;  %v1694_v38 = vld [vmem:[#allocation26_spill] sm:$0xff] }
 0x104   :  { %v328_v13 = vadd.f32 %v312_v3, %v232_v15  ;;  %v503_v41 = vadd.f32 %v471_v31, %v423_v50  ;;  %v314_v39 = vmul.f32 %v776_v14, %v1690_v21  ;;  %v383_v10 = vpop.permute.xlu1 %382  ;;  %v1691_v31 = vld [vmem:[#allocation10_spill] sm:$0xff]  ;;  %v1692_v43 = vunpack.c.h.bf16 %v1688_v2 }
 0x105   :  { %v233_v33 = vmul.f32 %v1689_v27, %v1687_v7  ;;  %v669_v63 = vadd.f32 %v668_v49, %v654_v42  ;;  %v874_v18 = vpop.eup %873  ;;  %v409_v20 = vmul.f32 %v807_v48, %v383_v10  ;;  %v611_v56 = vadd.f32 %v1263_v36, %v593_v59 }
 0x106   :  { %v639_v9 = vmul.f32 %v872_v44, %v503_v41  ;;  %v424_v6 = vadd.f32 %v408_v54, %v328_v13  ;;  %v612_v11 = vadd.f32 %v1263_v36, %v594_v23  ;;  %v234_v17 = vmul.f32 %v1692_v43, %v1691_v31  ;;  %v1697_v13 = vld [vmem:[#allocation13_spill] sm:$0xff] }
 0x107   :  { %v329_v46 = vadd.f32 %v313_v55, %v233_v33  ;;  %v483_v53 = vpop.permute.xlu0 %482  ;;  %v316_v24 = vmul.f32 %v780_v32, %v1693_v5  ;;  %v315_v0 = vmul.f32 %v779_v22, %v1694_v38 }
 0x108   :  { %v655_v29 = vand.u32 2147483647, %v639_v9  ;;  %v504_v30 = vadd.f32 %v475_v60, %v424_v6  ;;  %v876_v26 = vpop.eup %875  ;;  %v387_v40 = vpop.permute.xlu1 %386  ;;  %v330_v51 = vadd.f32 %v314_v39, %v234_v17  ;;  %879 = vrcp.f32 %v612_v11 }
 0x109   :  { %v425_v14 = vadd.f32 %v409_v20, %v329_v46  ;;  %v410_v48 = vmul.f32 %v808_v61, %v387_v40  ;;  %881 = vrcp.f32 %v611_v56  ;;  %v1696_v61 = vunpack.c.h.bf16 %v1674_v35 }
 0x10a   :  { %v670_v3 = vadd.f32 %v669_v63, %v655_v29  ;;  %v640_v16 = vmul.f32 %v874_v18, %v504_v30  ;;  %v1698_v60 = vunpack.c.l.bf16 %v1674_v35 }
 0x10b   :  { %v505_v62 = vadd.f32 %v479_v1, %v425_v14  ;;  %v426_v52 = vadd.f32 %v410_v48, %v330_v51  ;;  %v236_v49 = vmul.f32 %v1696_v61, %v1695_v47  ;;  %v491_v23 = vpop.permute.xlu0 %490 }
 0x10c   :  { %v656_v19 = vand.u32 2147483647, %v640_v16  ;;  %v878_v36 = vpop.eup %877  ;;  %v391_v25 = vpop.permute.xlu1 %390  ;;  %v235_v45 = vmul.f32 %v1698_v60, %v1697_v13 }
 0x10d   :  { %v641_v8 = vmul.f32 %v876_v26, %v505_v62  ;;  %v506_v12 = vadd.f32 %v483_v53, %v426_v52  ;;  %v411_v58 = vmul.f32 %v811_v34, %v391_v25  ;;  %v332_v55 = vadd.f32 %v316_v24, %v236_v49 }
 0x10e   :  { %v671_v44 = vadd.f32 %v670_v3, %v656_v19  ;;  %v331_v22 = vadd.f32 %v315_v0, %v235_v45 }
 0x10f   :  { %v657_v15 = vand.u32 2147483647, %v641_v8  ;;  %v642_v37 = vmul.f32 %v878_v36, %v506_v12 }
 0x110   :  { %v395_v32 = vpop.permute.xlu1 %394  ;;  %v427_v7 = vadd.f32 %v411_v58, %v331_v22 }
 0x111   :  { %v672_v50 = vadd.f32 %v671_v44, %v657_v15  ;;  %v658_v42 = vand.u32 2147483647, %v642_v37  ;;  %v412_v57 = vmul.f32 %v812_v4, %v395_v32 }
 0x112   :  { %v880_v59 = vpop.eup %879 }
 0x113   :  { %v428_v41 = vadd.f32 %v412_v57, %v332_v55  ;;  %v673_v54 = vadd.f32 %v672_v50, %v658_v42  ;;  %v882_v2 = vpop.eup %881 }
 0x115   :  { %v508_v27 = vadd.f32 %v491_v23, %v428_v41  ;;  %v487_v33 = vpop.permute.xlu1 %486 }
 0x116   :  { %v507_v35 = vadd.f32 %v487_v33, %v427_v7 }
 0x117   :  { %v644_v63 = vmul.f32 %v880_v59, %v508_v27 }
 0x118   :  { %v643_v9 = vmul.f32 %v882_v2, %v507_v35 }
 0x119   :  { %v660_v34 = vand.u32 2147483647, %v644_v63 }
 0x11a   :  { %v659_v6 = vand.u32 2147483647, %v643_v9 }
 0x11c   :  { %v674_v18 = vadd.f32 %v673_v54, %v659_v6 }
 0x11e   :  { %v675_v21 = vadd.f32 %v674_v18, %v660_v34 }
 0x120   :  { %676 = vst [vmem:[%s1571_s3] sm:$0xff] %v675_v21 }
 0x121   :  { %681 = vsyncpa [#allocation3], 1 }

</bundles_post_ra>
